<compile_context>
chip_gen: v6e
topology: v6e:2x2x1
jax: 0.10.0
libtpu: 0.0.40
codegen_flags: <defaults>
</compile_context>

<pallas_src>
import jax
import jax.numpy as jnp
from jax.experimental import pallas as pl
from jax.experimental.pallas import tpu as pltpu

# Model shapes (consistent with the module's forward on flattened images).
H_IMG = 16
W_IMG = 16
D = H_IMG * W_IMG      # flattened feature dim (256)
HID = 128              # MLP hidden width
M = 64                 # latent dimension (encoder outputs 2*M)
M_PAD = 128            # latent dim padded to a full lane width
BATCH_TILE = 32        # batch rows per grid step (multiple of 8)


def vae_neg_elbo_kernel(x_ref, eps_ref, w_enc_ref, w_dec_ref, b_ref, out_ref):
    x = x_ref[...]                                   # (TB, D)   float32
    eps = eps_ref[...]                               # (TB, 128) float32, lanes M: are 0

    # ---- packed weights: static, tile-aligned slices (no extra DMAs) ----
    we1 = w_enc_ref[0:D, :]                          # (D, HID)
    we2 = w_enc_ref[D:D + HID, :]                    # (HID, HID)
    we3_mu = w_enc_ref[D + HID:D + 2 * HID, :]       # (HID, 128), cols M: are 0
    we3_ls = w_enc_ref[D + 2 * HID:D + 3 * HID, :]   # (HID, 128), cols M: are 0

    wd1 = w_dec_ref[:, 0:HID]                        # (128, HID), rows M: are 0
    wd2 = w_dec_ref[:, HID:2 * HID]                  # (HID, HID)
    wd3 = w_dec_ref[:, 2 * HID:2 * HID + D]          # (HID, D)

    b = b_ref[...]                                   # (8, 256) packed biases
    be1 = b[0:1, 0:HID]
    be2 = b[1:2, 0:HID]
    b_mu = b[2:3, 0:HID]                             # lanes M: are 0
    b_ls = b[3:4, 0:HID]                             # lanes M: are 0
    bd1 = b[4:5, 0:HID]
    bd2 = b[5:6, 0:HID]
    bd3 = b[6:7, :]

    # ---- encoder MLP: D -> HID -> HID -> (mean, log_std), 128-lane dense ----
    h = jnp.maximum(jnp.dot(x, we1, preferred_element_type=jnp.float32) + be1, 0.0)
    h = jnp.maximum(jnp.dot(h, we2, preferred_element_type=jnp.float32) + be2, 0.0)
    mean = jnp.dot(h, we3_mu, preferred_element_type=jnp.float32) + b_mu      # (TB,128)
    log_std = jnp.dot(h, we3_ls, preferred_element_type=jnp.float32) + b_ls   # (TB,128)
    std = jnp.exp(log_std)                           # padded lanes -> exp(0) = 1

    # ---- reparameterized sample z = q.rsample(); padded lanes are exactly 0 ----
    z = mean + std * eps                             # (TB, 128)

    # ---- KL( N(mean,std) || N(0,I) ); padded lanes contribute exactly 0 ----
    kl = 0.5 * jnp.sum(std * std + mean * mean - 1.0 - 2.0 * log_std,
                       axis=-1, keepdims=True)       # (TB, 1)

    # ---- decoder MLP: 128 -> HID -> HID -> D  (Bernoulli logits), K=128 ----
    d = jnp.maximum(jnp.dot(z, wd1, preferred_element_type=jnp.float32) + bd1, 0.0)
    d = jnp.maximum(jnp.dot(d, wd2, preferred_element_type=jnp.float32) + bd2, 0.0)
    logits = jnp.dot(d, wd3, preferred_element_type=jnp.float32) + bd3        # (TB, D)

    # Bernoulli(logits=l).log_prob(x) = x*l - softplus(l)  (stable softplus)
    softplus = jnp.maximum(logits, 0.0) + jnp.log1p(jnp.exp(-jnp.abs(logits)))
    log_px = jnp.sum(x * logits - softplus, axis=-1, keepdims=True)           # (TB, 1)

    # Partial ELBO sum over this batch tile, written as a lane-dense tile
    # (avoids a masked (1,1) store; final mean happens in the JAX wrapper).
    partial = jnp.sum(log_px - kl)
    out_ref[...] = jnp.broadcast_to(partial, (1, 8, 128)).astype(jnp.float32)


def _pack_params(p):
    """Pack the 12 weight/bias tensors into 3 DMA-friendly buffers."""
    we3_mu = p["we3"][:, :M]
    we3_ls = p["we3"][:, M:]
    pad_cols = lambda w: jnp.pad(w, ((0, 0), (0, M_PAD - M)))
    w_enc = jnp.concatenate(
        [p["we1"], p["we2"], pad_cols(we3_mu), pad_cols(we3_ls)], axis=0)      # (640,128)

    wd1_pad = jnp.pad(p["wd1"], ((0, M_PAD - M), (0, 0)))                      # (128,HID)
    w_dec = jnp.concatenate([wd1_pad, p["wd2"], p["wd3"]], axis=1)             # (128,512)

    biases = jnp.zeros((8, D), jnp.float32)
    biases = biases.at[0, :HID].set(p["be1"])
    biases = biases.at[1, :HID].set(p["be2"])
    biases = biases.at[2, :M].set(p["be3"][:M])     # mean head bias (rest 0)
    biases = biases.at[3, :M].set(p["be3"][M:])     # log_std head bias (rest 0)
    biases = biases.at[4, :HID].set(p["bd1"])
    biases = biases.at[5, :HID].set(p["bd2"])
    biases = biases.at[6, :].set(p["bd3"])
    return w_enc, w_dec, biases


def vae_neg_elbo(x_img, eps, params):
    """x_img: (B, H_IMG, W_IMG) float32; eps: (B, M) float32 reparam noise."""
    B = x_img.shape[0]
    assert B % BATCH_TILE == 0, "batch must be a multiple of BATCH_TILE"
    G = B // BATCH_TILE

    x = x_img.reshape(B, D).astype(jnp.float32)
    eps_pad = jnp.pad(eps.astype(jnp.float32), ((0, 0), (0, M_PAD - M)))
    w_enc, w_dec, biases = _pack_params(params)

    partials = pl.pallas_call(
        vae_neg_elbo_kernel,
        out_shape=jax.ShapeDtypeStruct((G, 8, 128), jnp.float32),
        grid_spec=pltpu.PrefetchScalarGridSpec(
            num_scalar_prefetch=0,
            grid=(G,),
            in_specs=[
                pl.BlockSpec((BATCH_TILE, D), lambda i: (i, 0)),        # x tile
                pl.BlockSpec((BATCH_TILE, M_PAD), lambda i: (i, 0)),    # eps tile
                pl.BlockSpec((D + 3 * HID, HID), lambda i: (0, 0)),     # packed enc W
                pl.BlockSpec((HID, 2 * HID + D), lambda i: (0, 0)),     # packed dec W
                pl.BlockSpec((8, D), lambda i: (0, 0)),                 # packed biases
            ],
            out_specs=pl.BlockSpec((1, 8, 128), lambda i: (i, 0, 0)),
        ),
        compiler_params=pltpu.CompilerParams(
            dimension_semantics=("parallel",)),
    )(x, eps_pad, w_enc, w_dec, biases)

    elbo = jnp.sum(partials[:, 0, 0]) / B            # mean over batch
    return -elbo                                     # forward() returns -elbo


def vae_neg_elbo_ref(x_img, eps, params):
    """Pure-JAX reference (mirrors the PyTorch module's forward)."""
    B = x_img.shape[0]
    x = x_img.reshape(B, D).astype(jnp.float32)
    h = jax.nn.relu(x @ params["we1"] + params["be1"])
    h = jax.nn.relu(h @ params["we2"] + params["be2"])
    enc = h @ params["we3"] + params["be3"]
    mean, log_std = enc[:, :M], enc[:, M:]
    std = jnp.exp(log_std)
    z = mean + std * eps
    kl = 0.5 * jnp.sum(std * std + mean * mean - 1.0 - 2.0 * log_std, axis=-1)
    d = jax.nn.relu(z @ params["wd1"] + params["bd1"])
    d = jax.nn.relu(d @ params["wd2"] + params["bd2"])
    logits = d @ params["wd3"] + params["bd3"]
    log_px = jnp.sum(x * logits - jax.nn.softplus(logits), axis=-1)
    return -jnp.mean(log_px - kl)


def init_params(key):
    """Deterministic synthetic weights (PyTorch Linear shapes, stored (in, out))."""
    ks = jax.random.split(key, 12)

    def lin(kw, kb, fan_in, fan_out):
        w = jax.random.normal(kw, (fan_in, fan_out), jnp.float32) / jnp.sqrt(fan_in)
        b = jax.random.normal(kb, (fan_out,), jnp.float32) * 0.01
        return w, b

    we1, be1 = lin(ks[0], ks[1], D, HID)
    we2, be2 = lin(ks[2], ks[3], HID, HID)
    we3, be3 = lin(ks[4], ks[5], HID, 2 * M)
    wd1, bd1 = lin(ks[6], ks[7], M, HID)
    wd2, bd2 = lin(ks[8], ks[9], HID, HID)
    wd3, bd3 = lin(ks[10], ks[11], HID, D)
    return dict(we1=we1, be1=be1, we2=we2, be2=be2, we3=we3, be3=be3,
                wd1=wd1, bd1=bd1, wd2=wd2, bd2=bd2, wd3=wd3, bd3=bd3)


if __name__ == "__main__":
    key = jax.random.PRNGKey(0)
    k_x, k_eps, k_params = jax.random.split(key, 3)

    B = 64  # small demo batch; 2 grid steps of BATCH_TILE=32 rows each
    # Binary-ish data in [0, 1] (Bernoulli observation model), shape (B, H, W).
    x_img = jax.random.uniform(k_x, (B, H_IMG, W_IMG), jnp.float32)
    # Reparameterization noise for q.rsample() — generated outside the kernel
    # so the forward pass is deterministic for a fixed PRNGKey.
    eps = jax.random.normal(k_eps, (B, M), jnp.float32)
    params = init_params(k_params)

    neg_elbo = jax.jit(vae_neg_elbo)(x_img, eps, params)
    jax.block_until_ready(neg_elbo)

    ref = vae_neg_elbo_ref(x_img, eps, params)
    assert neg_elbo.shape == () and bool(jnp.isfinite(neg_elbo))
    # Loose tolerance: only source of difference is MXU matmul precision.
    assert abs(float(neg_elbo) - float(ref)) <= 0.05 * abs(float(ref)) + 2.0, \
        (float(neg_elbo), float(ref))
    print("KERNEL_OK")
</pallas_src>

<mosaic_0001>
module attributes {stable_mosaic.version = 11 : i64} {
  func.func @vae_neg_elbo_kernel(%arg0: i32, %arg1: memref<32x256xf32, #tpu.memory_space<vmem>>, %arg2: memref<32x128xf32, #tpu.memory_space<vmem>>, %arg3: memref<640x128xf32, #tpu.memory_space<vmem>>, %arg4: memref<128x512xf32, #tpu.memory_space<vmem>>, %arg5: memref<8x256xf32, #tpu.memory_space<vmem>>, %arg6: memref<1x8x128xf32, #tpu.memory_space<vmem>>) attributes {dimension_semantics = [#tpu.dimension_semantics<parallel>], iteration_bounds = array<i64: 2>, scalar_prefetch = 0 : i64, scratch_operands = 0 : i64, tpu.core_type = #tpu.core_type<tc>, window_params = [{transform_indices = @transform_0, window_bounds = array<i64: 32, 256>}, {transform_indices = @transform_1, window_bounds = array<i64: 32, 128>}, {pipeline_mode = #tpu.pipeline_mode<synchronous>, transform_indices = @transform_2, window_bounds = array<i64: 640, 128>}, {pipeline_mode = #tpu.pipeline_mode<synchronous>, transform_indices = @transform_3, window_bounds = array<i64: 128, 512>}, {pipeline_mode = #tpu.pipeline_mode<synchronous>, transform_indices = @transform_4, window_bounds = array<i64: 8, 256>}, {transform_indices = @transform_5, window_bounds = array<i64: 1, 8, 128>}]} {
    %c0 = arith.constant 0 : index
    %c0_0 = arith.constant 0 : index
    %0 = vector.load %arg1[%c0, %c0_0] : memref<32x256xf32, #tpu.memory_space<vmem>>, vector<32x256xf32>
    %c0_1 = arith.constant 0 : index
    %c0_2 = arith.constant 0 : index
    %1 = vector.load %arg2[%c0_1, %c0_2] : memref<32x128xf32, #tpu.memory_space<vmem>>, vector<32x128xf32>
    %c0_3 = arith.constant 0 : index
    %c0_4 = arith.constant 0 : index
    %2 = vector.load %arg3[%c0_3, %c0_4] : memref<640x128xf32, #tpu.memory_space<vmem>>, vector<256x128xf32>
    %c256 = arith.constant 256 : index
    %c0_5 = arith.constant 0 : index
    %3 = vector.load %arg3[%c256, %c0_5] : memref<640x128xf32, #tpu.memory_space<vmem>>, vector<128x128xf32>
    %c384 = arith.constant 384 : index
    %c0_6 = arith.constant 0 : index
    %4 = vector.load %arg3[%c384, %c0_6] : memref<640x128xf32, #tpu.memory_space<vmem>>, vector<128x128xf32>
    %c512 = arith.constant 512 : index
    %c0_7 = arith.constant 0 : index
    %5 = vector.load %arg3[%c512, %c0_7] : memref<640x128xf32, #tpu.memory_space<vmem>>, vector<128x128xf32>
    %c0_8 = arith.constant 0 : index
    %c0_9 = arith.constant 0 : index
    %6 = vector.load %arg4[%c0_8, %c0_9] : memref<128x512xf32, #tpu.memory_space<vmem>>, vector<128x128xf32>
    %c0_10 = arith.constant 0 : index
    %c128 = arith.constant 128 : index
    %7 = vector.load %arg4[%c0_10, %c128] : memref<128x512xf32, #tpu.memory_space<vmem>>, vector<128x128xf32>
    %c0_11 = arith.constant 0 : index
    %c256_12 = arith.constant 256 : index
    %8 = vector.load %arg4[%c0_11, %c256_12] : memref<128x512xf32, #tpu.memory_space<vmem>>, vector<128x256xf32>
    %c0_13 = arith.constant 0 : index
    %c0_14 = arith.constant 0 : index
    %9 = vector.load %arg5[%c0_13, %c0_14] : memref<8x256xf32, #tpu.memory_space<vmem>>, vector<8x256xf32>
    %10 = vector.extract_strided_slice %9 {offsets = [0, 0], sizes = [1, 128], strides = [1, 1]} : vector<8x256xf32> to vector<1x128xf32>
    %11 = vector.extract_strided_slice %9 {offsets = [1, 0], sizes = [1, 128], strides = [1, 1]} : vector<8x256xf32> to vector<1x128xf32>
    %12 = vector.extract_strided_slice %9 {offsets = [2, 0], sizes = [1, 128], strides = [1, 1]} : vector<8x256xf32> to vector<1x128xf32>
    %13 = vector.extract_strided_slice %9 {offsets = [3, 0], sizes = [1, 128], strides = [1, 1]} : vector<8x256xf32> to vector<1x128xf32>
    %14 = vector.extract_strided_slice %9 {offsets = [4, 0], sizes = [1, 128], strides = [1, 1]} : vector<8x256xf32> to vector<1x128xf32>
    %15 = vector.extract_strided_slice %9 {offsets = [5, 0], sizes = [1, 128], strides = [1, 1]} : vector<8x256xf32> to vector<1x128xf32>
    %16 = vector.extract_strided_slice %9 {offsets = [6, 0], sizes = [1, 256], strides = [1, 1]} : vector<8x256xf32> to vector<1x256xf32>
    %cst = arith.constant dense<0.000000e+00> : vector<32x128xf32>
    %17 = tpu.matmul %0, %2, %cst {dimension_numbers = #tpu.dot_dimension_numbers<[1], [0], [0], [1], [0, 0, 1, 1], [], []>} : vector<32x256xf32>, vector<256x128xf32>, vector<32x128xf32> -> vector<32x128xf32>
    %18 = vector.broadcast %10 : vector<1x128xf32> to vector<32x128xf32>
    %19 = arith.addf %17, %18 : vector<32x128xf32>
    %cst_15 = arith.constant 0.000000e+00 : f32
    %20 = vector.broadcast %cst_15 : f32 to vector<32x128xf32>
    %21 = arith.maximumf %19, %20 : vector<32x128xf32>
    %cst_16 = arith.constant dense<0.000000e+00> : vector<32x128xf32>
    %22 = tpu.matmul %21, %3, %cst_16 {dimension_numbers = #tpu.dot_dimension_numbers<[1], [0], [0], [1], [0, 0, 1, 1], [], []>} : vector<32x128xf32>, vector<128x128xf32>, vector<32x128xf32> -> vector<32x128xf32>
    %23 = vector.broadcast %11 : vector<1x128xf32> to vector<32x128xf32>
    %24 = arith.addf %22, %23 : vector<32x128xf32>
    %cst_17 = arith.constant 0.000000e+00 : f32
    %25 = vector.broadcast %cst_17 : f32 to vector<32x128xf32>
    %26 = arith.maximumf %24, %25 : vector<32x128xf32>
    %cst_18 = arith.constant dense<0.000000e+00> : vector<32x128xf32>
    %27 = tpu.matmul %26, %4, %cst_18 {dimension_numbers = #tpu.dot_dimension_numbers<[1], [0], [0], [1], [0, 0, 1, 1], [], []>} : vector<32x128xf32>, vector<128x128xf32>, vector<32x128xf32> -> vector<32x128xf32>
    %28 = vector.broadcast %12 : vector<1x128xf32> to vector<32x128xf32>
    %29 = arith.addf %27, %28 : vector<32x128xf32>
    %cst_19 = arith.constant dense<0.000000e+00> : vector<32x128xf32>
    %30 = tpu.matmul %26, %5, %cst_19 {dimension_numbers = #tpu.dot_dimension_numbers<[1], [0], [0], [1], [0, 0, 1, 1], [], []>} : vector<32x128xf32>, vector<128x128xf32>, vector<32x128xf32> -> vector<32x128xf32>
    %31 = vector.broadcast %13 : vector<1x128xf32> to vector<32x128xf32>
    %32 = arith.addf %30, %31 : vector<32x128xf32>
    %33 = math.exp %32 : vector<32x128xf32>
    %34 = arith.mulf %33, %1 : vector<32x128xf32>
    %35 = arith.addf %29, %34 : vector<32x128xf32>
    %36 = arith.mulf %33, %33 : vector<32x128xf32>
    %37 = arith.mulf %29, %29 : vector<32x128xf32>
    %38 = arith.addf %36, %37 : vector<32x128xf32>
    %cst_20 = arith.constant 1.000000e+00 : f32
    %39 = vector.broadcast %cst_20 : f32 to vector<32x128xf32>
    %40 = arith.subf %38, %39 : vector<32x128xf32>
    %cst_21 = arith.constant 2.000000e+00 : f32
    %41 = vector.broadcast %cst_21 : f32 to vector<32x128xf32>
    %42 = arith.mulf %41, %32 : vector<32x128xf32>
    %43 = arith.subf %40, %42 : vector<32x128xf32>
    %cst_22 = arith.constant dense<0.000000e+00> : vector<32xf32>
    %44 = vector.multi_reduction <add>, %43, %cst_22 [1] : vector<32x128xf32> to vector<32xf32>
    %45 = vector.shape_cast %44 : vector<32xf32> to vector<32x1xf32>
    %cst_23 = arith.constant 5.000000e-01 : f32
    %46 = vector.broadcast %cst_23 : f32 to vector<32x1xf32>
    %47 = arith.mulf %46, %45 : vector<32x1xf32>
    %cst_24 = arith.constant dense<0.000000e+00> : vector<32x128xf32>
    %48 = tpu.matmul %35, %6, %cst_24 {dimension_numbers = #tpu.dot_dimension_numbers<[1], [0], [0], [1], [0, 0, 1, 1], [], []>} : vector<32x128xf32>, vector<128x128xf32>, vector<32x128xf32> -> vector<32x128xf32>
    %49 = vector.broadcast %14 : vector<1x128xf32> to vector<32x128xf32>
    %50 = arith.addf %48, %49 : vector<32x128xf32>
    %cst_25 = arith.constant 0.000000e+00 : f32
    %51 = vector.broadcast %cst_25 : f32 to vector<32x128xf32>
    %52 = arith.maximumf %50, %51 : vector<32x128xf32>
    %cst_26 = arith.constant dense<0.000000e+00> : vector<32x128xf32>
    %53 = tpu.matmul %52, %7, %cst_26 {dimension_numbers = #tpu.dot_dimension_numbers<[1], [0], [0], [1], [0, 0, 1, 1], [], []>} : vector<32x128xf32>, vector<128x128xf32>, vector<32x128xf32> -> vector<32x128xf32>
    %54 = vector.broadcast %15 : vector<1x128xf32> to vector<32x128xf32>
    %55 = arith.addf %53, %54 : vector<32x128xf32>
    %cst_27 = arith.constant 0.000000e+00 : f32
    %56 = vector.broadcast %cst_27 : f32 to vector<32x128xf32>
    %57 = arith.maximumf %55, %56 : vector<32x128xf32>
    %cst_28 = arith.constant dense<0.000000e+00> : vector<32x256xf32>
    %58 = tpu.matmul %57, %8, %cst_28 {dimension_numbers = #tpu.dot_dimension_numbers<[1], [0], [0], [1], [0, 0, 1, 1], [], []>} : vector<32x128xf32>, vector<128x256xf32>, vector<32x256xf32> -> vector<32x256xf32>
    %59 = vector.broadcast %16 : vector<1x256xf32> to vector<32x256xf32>
    %60 = arith.addf %58, %59 : vector<32x256xf32>
    %cst_29 = arith.constant 0.000000e+00 : f32
    %61 = vector.broadcast %cst_29 : f32 to vector<32x256xf32>
    %62 = arith.maximumf %60, %61 : vector<32x256xf32>
    %63 = math.absf %60 : vector<32x256xf32>
    %cst_30 = arith.constant 0.000000e+00 : f32
    %64 = vector.broadcast %cst_30 : f32 to vector<32x256xf32>
    %65 = arith.subf %64, %63 : vector<32x256xf32>
    %66 = math.exp %65 : vector<32x256xf32>
    %67 = math.log1p %66 : vector<32x256xf32>
    %68 = arith.addf %62, %67 : vector<32x256xf32>
    %69 = arith.mulf %0, %60 : vector<32x256xf32>
    %70 = arith.subf %69, %68 : vector<32x256xf32>
    %cst_31 = arith.constant dense<0.000000e+00> : vector<32xf32>
    %71 = vector.multi_reduction <add>, %70, %cst_31 [1] : vector<32x256xf32> to vector<32xf32>
    %72 = vector.shape_cast %71 : vector<32xf32> to vector<32x1xf32>
    %73 = arith.subf %72, %47 : vector<32x1xf32>
    %74 = vector.shape_cast %73 : vector<32x1xf32> to vector<1x32x1xf32>
    %cst_32 = arith.constant dense<0.000000e+00> : vector<1xf32>
    %75 = vector.multi_reduction <add>, %74, %cst_32 [1, 2] : vector<1x32x1xf32> to vector<1xf32>
    %76 = vector.shape_cast %75 : vector<1xf32> to vector<1x1x1xf32>
    %77 = vector.extract %76[0, 0, 0] : f32 from vector<1x1x1xf32>
    %78 = vector.broadcast %77 : f32 to vector<1x8x128xf32>
    %c0_33 = arith.constant 0 : index
    %c0_34 = arith.constant 0 : index
    %c0_35 = arith.constant 0 : index
    %79 = vector.load %arg6[%c0_33, %c0_34, %c0_35] : memref<1x8x128xf32, #tpu.memory_space<vmem>>, vector<1x8x128xf32>
    tpu.vector_store %arg6[%c0_33, %c0_34, %c0_35], %78 {strides = array<i32>} : memref<1x8x128xf32, #tpu.memory_space<vmem>>, vector<1x8x128xf32>,
    return
  }
  func.func @transform_0(%arg0: i32) -> (i32, i32) {
    %c0_i32 = arith.constant 0 : i32
    %c0_i32_0 = arith.constant 0 : i32
    return %arg0, %c0_i32 : i32, i32
  }
  func.func @transform_1(%arg0: i32) -> (i32, i32) {
    %c0_i32 = arith.constant 0 : i32
    %c0_i32_0 = arith.constant 0 : i32
    return %arg0, %c0_i32 : i32, i32
  }
  func.func @transform_2(%arg0: i32) -> (i32, i32) {
    %c0_i32 = arith.constant 0 : i32
    %c0_i32_0 = arith.constant 0 : i32
    %c0_i32_1 = arith.constant 0 : i32
    return %c0_i32, %c0_i32_0 : i32, i32
  }
  func.func @transform_3(%arg0: i32) -> (i32, i32) {
    %c0_i32 = arith.constant 0 : i32
    %c0_i32_0 = arith.constant 0 : i32
    %c0_i32_1 = arith.constant 0 : i32
    return %c0_i32, %c0_i32_0 : i32, i32
  }
  func.func @transform_4(%arg0: i32) -> (i32, i32) {
    %c0_i32 = arith.constant 0 : i32
    %c0_i32_0 = arith.constant 0 : i32
    %c0_i32_1 = arith.constant 0 : i32
    return %c0_i32, %c0_i32_0 : i32, i32
  }
  func.func @transform_5(%arg0: i32) -> (i32, i32, i32) {
    %c0_i32 = arith.constant 0 : i32
    %c0_i32_0 = arith.constant 0 : i32
    %c0_i32_1 = arith.constant 0 : i32
    return %arg0, %c0_i32, %c0_i32_0 : i32, i32, i32
  }
}

</mosaic_0001>

<bundles_post_ra>
// kernel: vae_neg_elbo.1
= control target key start
LH: loop header
LB: loop body
LE: loop exit
PB: predicated region body
PF: predicated region fallthrough
CT: control target
= control target key end

     0   :  { %s1793_s18 = smov 0   ;;  %s2415_s0 = inlined_call_operand.vmem [shape: f32[64,256], index: 0, kind: input, shape index: {}]   ;;  %s2416_s1 = inlined_call_operand.vmem [shape: f32[64,128], index: 1, kind: input, shape index: {}]   ;;  %s2417_s2 = inlined_call_operand.vmem [shape: f32[640,128], index: 2, kind: input, shape index: {}]   ;;  %s2418_s3 = inlined_call_operand.vmem [shape: f32[128,512], index: 3, kind: input, shape index: {}]   ;;  %s2419_s4 = inlined_call_operand.vmem [shape: f32[8,256], index: 4, kind: input, shape index: {}]   ;;  %s2420_s5 = inlined_call_operand.vmem [shape: f32[2,8,128], index: 5, kind: output, shape index: {}]  }
   0x1 LB: > { %s1799_s19 = sadd.s32 4294967295, %s1760_s18   ;;  %p1347_p0 = scmp.ge.s32.totalorder %s1760_s18, 1  ;;  %s1760_s18 = sphi %s1793_s18, %s15_s18  }
   0x2   : > { %p200_p1 = scmp.lt.s32.totalorder %s1760_s18, 3 }
   0x4   : > { %p201_p2 = pnand %p1347_p0, %p200_p1 }
   0x5   : > { %s1348_s26 = sshll.u32 (!%p201_p2), %s1799_s19, 2  ;;  %p246_p4 = scmp.lt.s32.totalorder (!%p201_p2), %s1799_s19, 1 }
   0x6   : > { %204 = sbr.rel (%p201_p2) target bundleno = 1665 (0x681), region = 40  ;;  %p234_p3 = scmp.lt.s32.totalorder (!%p201_p2), %s1348_s26, 7 }
   0xb   : > { %v293_v0 = vld [vmem:[%s2417_s2 + $0xf8] sm:$0xff]  ;;  %v292_v2 = vld [vmem:[%s2417_s2 + $0xf0] sm:$0xff]  ;;  %v291_v4 = vld [vmem:[%s2417_s2 + $0xe8] sm:$0xff]  ;;  %s2430_s26 = smov (!%p234_p3, %s1348_s26), 7  ;;  %vm1259_vm8 = vcmask 7168   ;;  %s2432_s19 = smov (!%p246_p4, %s1799_s19), 1 }
   0xc   : > { %v277_v1 = vld [vmem:[%s2417_s2 + $0x78] sm:$0xff]  ;;  %1361 = vmatprep.subr.mxu1 %v293_v0  ;;  %v276_v3 = vld [vmem:[%s2417_s2 + $0x70] sm:$0xff]  ;;  %v275_v5 = vld [vmem:[%s2417_s2 + $0x68] sm:$0xff]  ;;  %s1360_s12 = sshll.u32 %s2430_s26, 4  ;;  %s1352_s29 = sshll.u32 %s2430_s26, 3 }
   0xd   : > { %1362 = vmatpush3.msra.mxu1 %v277_v1  ;;  %v290_v6 = vld [vmem:[%s2417_s2 + $0xe0] sm:$0xff]  ;;  %v289_v8 = vld [vmem:[%s2417_s2 + $0xd8] sm:$0xff]  ;;  %s1840_s21 = scalar_lea.vmem %s2415_s0, %s1360_s12  ;;  %v288_v10 = vld [vmem:[%s2417_s2 + $0xd0] sm:$0xff]  ;;  %s244_s7 = scalar_lea.vmem %s2416_s1, %s1352_s29 }
   0xe   : > { %1363 = vmatprep.subr.mxu1 %v292_v2  ;;  %v274_v7 = vld [vmem:[%s2417_s2 + $0x60] sm:$0xff]  ;;  %v273_v9 = vld [vmem:[%s2417_s2 + $0x58] sm:$0xff]  ;;  %v272_v11 = vld [vmem:[%s2417_s2 + $0x50] sm:$0xff] }
   0xf   : > { %1364 = vmatpush3.msra.mxu1 %v276_v3  ;;  %v287_v12 = vld [vmem:[%s2417_s2 + $0xc8] sm:$0xff]  ;;  %v286_v15 = vld [vmem:[%s2417_s2 + $0xc0] sm:$0xff]  ;;  %v285_v17 = vld [vmem:[%s2417_s2 + $0xb8] sm:$0xff] }
  0x10   : > { %1365 = vmatprep.subr.mxu1 %v291_v4  ;;  %v251_v13 = vld [vmem:[%s1840_s21 + $0x8] sm:$0xff]  ;;  %v270_v16 = vld [vmem:[%s2417_s2 + $0x40] sm:$0xff]  ;;  %v269_v18 = vld [vmem:[%s2417_s2 + $0x38] sm:$0xff] }
  0x11   : > { %1366 = vmatpush3.msra.mxu1 %v275_v5  ;;  %v271_v14 = vld [vmem:[%s2417_s2 + $0x48] sm:$0xff]  ;;  %476 = vmatprep.mubr.f32.mxu1 %v251_v13  ;;  %v284_v19 = vld [vmem:[%s2417_s2 + $0xb0] sm:$0xff]  ;;  %v282_v23 = vld [vmem:[%s2417_s2 + $0xa0] sm:$0xff]  ;;  %v408_v5 = vlaneseq }
  0x12   : > { %1367 = vmatprep.subr.mxu1 %v290_v6  ;;  %v268_v20 = vld [vmem:[%s2417_s2 + $0x30] sm:$0xff]  ;;  %v283_v21 = vld [vmem:[%s2417_s2 + $0xa8] sm:$0xff]  ;;  %v266_v24 = vld [vmem:[%s2417_s2 + $0x20] sm:$0xff] }
  0x13   : > { %1368 = vmatpush3.msra.mxu1 %v274_v7  ;;  %v267_v22 = vld [vmem:[%s2417_s2 + $0x28] sm:$0xff]  ;;  %v281_v25 = vld [vmem:[%s2417_s2 + $0x98] sm:$0xff]  ;;  %v280_v27 = vld [vmem:[%s2417_s2 + $0x90] sm:$0xff]  ;;  %v2003_v6 = vshrl.u32 %v408_v5, 7 }
  0x14   : > { %1369 = vmatprep.subr.mxu1 %v289_v8  ;;  %v265_v26 = vld [vmem:[%s2417_s2 + $0x18] sm:$0xff]  ;;  %v264_v28 = vld [vmem:[%s2417_s2 + $0x10] sm:$0xff]  ;;  %v279_v29 = vld [vmem:[%s2417_s2 + $0x88] sm:$0xff] }
  0x15   : > { %1370 = vmatpush3.msra.mxu1 %v273_v9  ;;  %v263_v30 = vld [vmem:[%s2417_s2 + $0x8] sm:$0xff]  ;;  %v278_v31 = vld [vmem:[%s2417_s2 + $0x80] sm:$0xff]  ;;  %v309_v34 = vld [vmem:[%s2417_s2 + $0x178] sm:$0xff]  ;;  %v410_v7 = vsub.s32 0, %v2003_v6 }
  0x16   : > { %1371 = vmatprep.subr.mxu1 %v288_v10  ;;  %v262_v32 = vld [vmem:[%s2417_s2] sm:$0xff]  ;;  %v253_v35 = vld [vmem:[%s1840_s21 + $0x18] sm:$0xff]  ;;  %v308_v36 = vld [vmem:[%s2417_s2 + $0x170] sm:$0xff] }
  0x17   : > { %1372 = vmatpush3.msra.mxu1 %v272_v11  ;;  %v250_v33 = vld [vmem:[%s1840_s21] sm:$0xff]  ;;  %v252_v37 = vld [vmem:[%s1840_s21 + $0x10] sm:$0xff]  ;;  %v307_v38 = vld [vmem:[%s2417_s2 + $0x168] sm:$0xff] }
  0x18   : > { %1373 = vmatprep.subr.mxu1 %v287_v12  ;;  %v255_v39 = vld [vmem:[%s1840_s21 + $0x28] sm:$0xff]  ;;  %v306_v40 = vld [vmem:[%s2417_s2 + $0x160] sm:$0xff]  ;;  %v305_v42 = vld [vmem:[%s2417_s2 + $0x158] sm:$0xff] }
  0x19   : > { %1374 = vmatpush3.msra.mxu1 %v271_v14  ;;  %v254_v41 = vld [vmem:[%s1840_s21 + $0x20] sm:$0xff]  ;;  %v257_v43 = vld [vmem:[%s1840_s21 + $0x38] sm:$0xff]  ;;  %v304_v44 = vld [vmem:[%s2417_s2 + $0x150] sm:$0xff] }
  0x1a   : > { %1375 = vmatprep.subr.mxu1 %v286_v15  ;;  %v256_v45 = vld [vmem:[%s1840_s21 + $0x30] sm:$0xff]  ;;  %v303_v46 = vld [vmem:[%s2417_s2 + $0x148] sm:$0xff]  ;;  %v302_v47 = vld [vmem:[%s2417_s2 + $0x140] sm:$0xff] }
  0x1b   : > { %1376 = vmatpush3.msra.mxu1 %v270_v16  ;;  %v301_v48 = vld [vmem:[%s2417_s2 + $0x138] sm:$0xff]  ;;  %v300_v49 = vld [vmem:[%s2417_s2 + $0x130] sm:$0xff]  ;;  %v299_v50 = vld [vmem:[%s2417_s2 + $0x128] sm:$0xff] }
  0x1c   : > { %1377 = vmatprep.subr.mxu1 %v285_v17  ;;  %v298_v51 = vld [vmem:[%s2417_s2 + $0x120] sm:$0xff]  ;;  %v297_v52 = vld [vmem:[%s2417_s2 + $0x118] sm:$0xff]  ;;  %v296_v53 = vld [vmem:[%s2417_s2 + $0x110] sm:$0xff] }
  0x1d   : > { %1378 = vmatpush3.msra.mxu1 %v269_v18  ;;  %v295_v54 = vld [vmem:[%s2417_s2 + $0x108] sm:$0xff]  ;;  %v294_v55 = vld [vmem:[%s2417_s2 + $0x100] sm:$0xff]  ;;  %v325_v56 = vld [vmem:[%s2417_s2 + $0x1f8] sm:$0xff] }
  0x1e   : > { %1379 = vmatprep.subr.mxu1 %v284_v19  ;;  %v341_v57 = vld [vmem:[%s2417_s2 + $0x278] sm:$0xff]  ;;  %v324_v58 = vld [vmem:[%s2417_s2 + $0x1f0] sm:$0xff]  ;;  %1543 = vmatprep.subr.mxu0 %v325_v56  ;;  %v323_v59 = vld [vmem:[%s2417_s2 + $0x1e8] sm:$0xff] }
  0x1f   : > { %1380 = vmatpush3.msra.mxu1 %v268_v20  ;;  %1544 = vmatpush3.msra.mxu0 %v325_v56  ;;  %v322_v60 = vld [vmem:[%s2417_s2 + $0x1e0] sm:$0xff]  ;;  %v321_v61 = vld [vmem:[%s2417_s2 + $0x1d8] sm:$0xff]  ;;  %v320_v62 = vld [vmem:[%s2417_s2 + $0x1d0] sm:$0xff] }
  0x20   : > { %1381 = vmatprep.subr.mxu1 %v283_v21  ;;  %1545 = vmatprep.subr.mxu0 %v324_v58  ;;  %v319_v63 = vld [vmem:[%s2417_s2 + $0x1c8] sm:$0xff]  ;;  %v318_v0 = vld [vmem:[%s2417_s2 + $0x1c0] sm:$0xff]  ;;  %v317_v1 = vld [vmem:[%s2417_s2 + $0x1b8] sm:$0xff] }
  0x21   : > { %1382 = vmatpush3.msra.mxu1 %v267_v22  ;;  %1546 = vmatpush3.msra.mxu0 %v324_v58  ;;  %v316_v2 = vld [vmem:[%s2417_s2 + $0x1b0] sm:$0xff]  ;;  %v315_v3 = vld [vmem:[%s2417_s2 + $0x1a8] sm:$0xff]  ;;  %v314_v4 = vld [vmem:[%s2417_s2 + $0x1a0] sm:$0xff] }
  0x22   : > { %1383 = vmatprep.subr.mxu1 %v282_v23  ;;  %1547 = vmatprep.subr.mxu0 %v323_v59  ;;  %v2009_v8 = vld [vmem:[%s2419_s4] sm:$0xff] }
  0x23   : > { %1384 = vmatpush3.msra.mxu1 %v266_v24  ;;  %1548 = vmatpush3.msra.mxu0 %v323_v59  ;;  %v411_v10 = vrot.slane %v2009_v8, %v410_v7  ;;  %v340_v24 = vld [vmem:[%s2417_s2 + $0x270] sm:$0xff]  ;;  %v356_v58 = vld [vmem:[%s2418_s3 + $0x1c0] sm:$0xff] }
  0x24   : > { %1385 = vmatprep.subr.mxu1 %v281_v25  ;;  %1549 = vmatprep.subr.mxu0 %v322_v60  ;;  %v351_v5 = vld [vmem:[%s2418_s3 + $0x120] sm:$0xff] }
  0x25   : > { %1386 = vmatpush3.msra.mxu1 %v265_v26  ;;  %1550 = vmatpush3.msra.mxu0 %v322_v60  ;;  %v355_v60 = vld [vmem:[%s2418_s3 + $0x1a0] sm:$0xff] }
  0x26   : > { %1387 = vmatprep.subr.mxu1 %v280_v27  ;;  %1551 = vmatprep.subr.mxu0 %v321_v61  ;;  %v339_v27 = vld [vmem:[%s2417_s2 + $0x268] sm:$0xff]  ;;  %v350_v7 = vld [vmem:[%s2418_s3 + $0x100] sm:$0xff] }
  0x27   : > { %1388 = vmatpush3.msra.mxu1 %v264_v28  ;;  %1552 = vmatpush3.msra.mxu0 %v321_v61 }
  0x28   : > { %1389 = vmatprep.subr.mxu1 %v279_v29  ;;  %1553 = vmatprep.subr.mxu0 %v320_v62 }
  0x29   : > { %1390 = vmatpush3.msra.mxu1 %v263_v30  ;;  %1554 = vmatpush3.msra.mxu0 %v320_v62  ;;  %v338_v30 = vld [vmem:[%s2417_s2 + $0x260] sm:$0xff] }
  0x2a   : > { %1391 = vmatprep.subr.mxu1 %v278_v31  ;;  %1555 = vmatprep.subr.mxu0 %v319_v63 }
  0x2b   : > { %1392 = vmatpush3.msra.mxu1 %v262_v32  ;;  %1556 = vmatpush3.msra.mxu0 %v319_v63  ;;  %v337_v32 = vld [vmem:[%s2417_s2 + $0x258] sm:$0xff] }
  0x2c   : > { %477 = vmatmul.mubr.f32.vlgmr.msra.gmra.mxu1 %v250_v33  ;;  %1505 = vmatprep.subr.mxu1 %v309_v34 }
  0x2d   : > { %481 = vmatprep.mubr.f32.mxu1 %v253_v35  ;;  %1506 = vmatpush3.msra.mxu1 %v309_v34  ;;  %v336_v34 = vld [vmem:[%s2417_s2 + $0x250] sm:$0xff]  ;;  %v335_v35 = vld [vmem:[%s2417_s2 + $0x248] sm:$0xff] }
  0x2e   : > { %1507 = vmatprep.subr.mxu1 %v308_v36  ;;  %1557 = vmatprep.subr.mxu0 %v318_v0 }
  0x2f   : > { %1508 = vmatpush3.msra.mxu1 %v308_v36  ;;  %1558 = vmatpush3.msra.mxu0 %v318_v0  ;;  %v334_v36 = vld [vmem:[%s2417_s2 + $0x240] sm:$0xff] }
  0x30   : > { %482 = vmatmul.mubr.f32.gmra.mxu1 %v252_v37  ;;  %1509 = vmatprep.subr.mxu1 %v307_v38  ;;  %v333_v37 = vld [vmem:[%s2417_s2 + $0x238] sm:$0xff] }
  0x31   : > { %486 = vmatprep.mubr.f32.mxu1 %v255_v39  ;;  %1510 = vmatpush3.msra.mxu1 %v307_v38  ;;  %v332_v38 = vld [vmem:[%s2417_s2 + $0x230] sm:$0xff]  ;;  %v331_v39 = vld [vmem:[%s2417_s2 + $0x228] sm:$0xff] }
  0x32   : > { %1511 = vmatprep.subr.mxu1 %v306_v40  ;;  %1559 = vmatprep.subr.mxu0 %v317_v1 }
  0x33   : > { %1512 = vmatpush3.msra.mxu1 %v306_v40  ;;  %1560 = vmatpush3.msra.mxu0 %v317_v1  ;;  %v330_v40 = vld [vmem:[%s2417_s2 + $0x220] sm:$0xff] }
  0x34   : > { %487 = vmatmul.mubr.f32.gmra.mxu1 %v254_v41  ;;  %1513 = vmatprep.subr.mxu1 %v305_v42  ;;  %v313_v41 = vld [vmem:[%s2417_s2 + $0x198] sm:$0xff] }
  0x35   : > { %491 = vmatprep.mubr.f32.mxu1 %v257_v43  ;;  %1514 = vmatpush3.msra.mxu1 %v305_v42  ;;  %v329_v42 = vld [vmem:[%s2417_s2 + $0x218] sm:$0xff]  ;;  %v312_v43 = vld [vmem:[%s2417_s2 + $0x190] sm:$0xff] }
  0x36   : > { %1515 = vmatprep.subr.mxu1 %v304_v44  ;;  %1561 = vmatprep.subr.mxu0 %v316_v2 }
  0x37   : > { %1516 = vmatpush3.msra.mxu1 %v304_v44  ;;  %1562 = vmatpush3.msra.mxu0 %v316_v2  ;;  %v328_v44 = vld [vmem:[%s2417_s2 + $0x210] sm:$0xff]  ;;  %v354_v2 = vld [vmem:[%s2418_s3 + $0x180] sm:$0xff] }
  0x38   : > { %492 = vmatmul.mubr.f32.gmra.mxu1 %v256_v45  ;;  %1517 = vmatprep.subr.mxu1 %v303_v46  ;;  %v311_v45 = vld [vmem:[%s2417_s2 + $0x188] sm:$0xff] }
  0x39   : > { %1518 = vmatpush3.msra.mxu1 %v303_v46  ;;  %1563 = vmatprep.subr.mxu0 %v315_v3  ;;  %v327_v46 = vld [vmem:[%s2417_s2 + $0x208] sm:$0xff] }
  0x3a   : > { %1519 = vmatprep.subr.mxu1 %v302_v47  ;;  %1564 = vmatpush3.msra.mxu0 %v315_v3  ;;  %v353_v3 = vld [vmem:[%s2418_s3 + $0x160] sm:$0xff] }
  0x3b   : > { %1520 = vmatpush3.msra.mxu1 %v302_v47  ;;  %1565 = vmatprep.subr.mxu0 %v314_v4  ;;  %v310_v47 = vld [vmem:[%s2417_s2 + $0x180] sm:$0xff] }
  0x3c   : > { %1521 = vmatprep.subr.mxu1 %v301_v48  ;;  %1566 = vmatpush3.msra.mxu0 %v314_v4  ;;  %v352_v4 = vld [vmem:[%s2418_s3 + $0x140] sm:$0xff] }
  0x3d   : > { %1522 = vmatpush3.msra.mxu1 %v301_v48  ;;  %1567 = vmatprep.subr.mxu0 %v313_v41  ;;  %v326_v48 = vld [vmem:[%s2417_s2 + $0x200] sm:$0xff] }
  0x3e   : > { %1523 = vmatprep.subr.mxu1 %v300_v49  ;;  %1568 = vmatpush3.msra.mxu0 %v313_v41 }
  0x3f   : > { %1524 = vmatpush3.msra.mxu1 %v300_v49  ;;  %1569 = vmatprep.subr.mxu0 %v312_v43  ;;  %v357_v49 = vld [vmem:[%s2418_s3 + $0x1e0] sm:$0xff] }
  0x40   : > { %1525 = vmatprep.subr.mxu1 %v299_v50  ;;  %1570 = vmatpush3.msra.mxu0 %v312_v43 }
  0x41   : > { %1526 = vmatpush3.msra.mxu1 %v299_v50  ;;  %1571 = vmatprep.subr.mxu0 %v311_v45  ;;  %v503_v50 = vsub.s32 1, %v2003_v6 }
  0x42   : > { %1527 = vmatprep.subr.mxu1 %v298_v51  ;;  %1572 = vmatpush3.msra.mxu0 %v311_v45 }
  0x43   : > { %1528 = vmatpush3.msra.mxu1 %v298_v51  ;;  %1573 = vmatprep.subr.mxu0 %v310_v47  ;;  %v504_v51 = vrot.slane %v2009_v8, %v503_v50 }
  0x44   : > { %1529 = vmatprep.subr.mxu1 %v297_v52  ;;  %1574 = vmatpush3.msra.mxu0 %v310_v47 }
  0x45   : > { %1530 = vmatpush3.msra.mxu1 %v297_v52  ;;  %1619 = vmatprep.subr.mxu0 %v357_v49 }
  0x46   : > { %1531 = vmatprep.subr.mxu1 %v296_v53 }
  0x47   : > { %1532 = vmatpush3.msra.mxu1 %v296_v53 }
  0x48   : > { %1533 = vmatprep.subr.mxu1 %v295_v54 }
  0x49   : > { %1534 = vmatpush3.msra.mxu1 %v295_v54 }
  0x4a   : > { %1535 = vmatprep.subr.mxu1 %v294_v55 }
  0x4b   : > { %1536 = vmatpush3.msra.mxu1 %v294_v55 }
  0x4c   : > { %1581 = vmatprep.subr.mxu1 %v341_v57 }
  0xec   : > { %v1393_v9 = vpop.f32.mrf.mxu1 }
  0xee   : > { %v1394_v11 = vpop.f32.mrf.mxu1 }
  0xef   : > { %v1395_v12 = vadd.f32 %v1394_v11, %v1393_v9  ;;  %v349_v9 = vld [vmem:[%s2418_s3 + $0xe0] sm:$0xff] }
  0xf0   : > { %v1396_v13 = vpop.f32.mrf.mxu1  ;;  %v347_v11 = vld [vmem:[%s2418_s3 + $0xa0] sm:$0xff] }
  0xf1   : > { %v479_v14 = vadd.f32 %v1395_v12, %v411_v10  ;;  %v346_v12 = vld [vmem:[%s2418_s3 + $0x80] sm:$0xff] }
  0xf2   : > { %v1397_v15 = vpop.f32.mrf.mxu1 }
  0xf3   : > { %v497_v16 = vmax.f32 %v479_v14, 0.0  ;;  %v1398_v17 = vadd.f32 %v1397_v15, %v1396_v13  ;;  %v345_v13 = vld [vmem:[%s2418_s3 + $0x60] sm:$0xff] }
  0xf4   : > { %v1399_v18 = vpop.f32.mrf.mxu1  ;;  %v344_v14 = vld [vmem:[%s2418_s3 + $0x40] sm:$0xff] }
  0xf5   : > { %v484_v19 = vadd.f32 %v1398_v17, %v411_v10  ;;  %1537 = vmatprep.mubr.f32.mxu1 %v497_v16  ;;  %v343_v15 = vld [vmem:[%s2418_s3 + $0x20] sm:$0xff]  ;;  %v685_v17 = vsub.s32 3, %v2003_v6 }
  0xf6   : > { %v1400_v20 = vpop.f32.mrf.mxu1  ;;  %v342_v16 = vld [vmem:[%s2418_s3] sm:$0xff] }
  0xf7   : > { %v498_v21 = vmax.f32 %v484_v19, 0.0  ;;  %v1401_v22 = vadd.f32 %v1400_v20, %v1399_v18  ;;  %v686_v18 = vrot.slane %v2009_v8, %v685_v17 }
  0xf8   : > { %v1402_v23 = vpop.f32.mrf.mxu1 }
  0xf9   : > { %v489_v25 = vadd.f32 %v1401_v22, %v411_v10  ;;  %1538 = vmatmul.mubr.f32.vlgmr.msra.gmra.mxu1 %v498_v21 }
  0xfa   : > { %v1403_v26 = vpop.f32.mrf.mxu1  ;;  %1582 = vmatpush3.msra.mxu1 %v341_v57 }
  0xfb   : > { %v499_v28 = vmax.f32 %v489_v25, 0.0  ;;  %v1404_v29 = vadd.f32 %v1403_v26, %v1402_v23  ;;  %1583 = vmatprep.subr.mxu1 %v340_v24  ;;  %v596_v25 = vsub.s32 2, %v2003_v6 }
  0xfc   : > { %1584 = vmatpush3.msra.mxu1 %v340_v24 }
  0xfd   : > { %v494_v31 = vadd.f32 %v1404_v29, %v411_v10  ;;  %1540 = vmatprep.mubr.f32.mxu1 %v499_v28  ;;  %1585 = vmatprep.subr.mxu1 %v339_v27  ;;  %v348_v10 = vld [vmem:[%s2418_s3 + $0xc0] sm:$0xff] }
  0xfe   : > { %1586 = vmatpush3.msra.mxu1 %v339_v27 }
  0xff   : > { %v500_v33 = vmax.f32 %v494_v31, 0.0  ;;  %1587 = vmatprep.subr.mxu1 %v338_v30 }
 0x100   : > { %1588 = vmatpush3.msra.mxu1 %v338_v30  ;;  %v597_v30 = vrot.slane %v2009_v8, %v596_v25  ;;  %v367_v25 = vld [vmem:[%s2418_s3 + $0x128] sm:$0xff] }
 0x101   : > { %1541 = vmatmul.mubr.f32.gmra.mxu1 %v500_v33  ;;  %1589 = vmatprep.subr.mxu1 %v337_v32 }
 0x102   : > { %1590 = vmatpush3.msra.mxu1 %v337_v32 }
 0x103   : > { %1591 = vmatprep.subr.mxu1 %v336_v34 }
 0x104   : > { %1592 = vmatpush3.msra.mxu1 %v336_v34 }
 0x105   : > { %1593 = vmatprep.subr.mxu1 %v335_v35 }
 0x106   : > { %1594 = vmatpush3.msra.mxu1 %v335_v35 }
 0x107   : > { %1595 = vmatprep.subr.mxu1 %v334_v36 }
 0x108   : > { %1596 = vmatpush3.msra.mxu1 %v334_v36 }
 0x109   : > { %1597 = vmatprep.subr.mxu1 %v333_v37 }
 0x10a   : > { %1598 = vmatpush3.msra.mxu1 %v333_v37 }
 0x10b   : > { %1599 = vmatprep.subr.mxu1 %v332_v38 }
 0x10c   : > { %1600 = vmatpush3.msra.mxu1 %v332_v38  ;;  %v259_v38 = vld [vmem:[%s244_s7 + $0x8] sm:$0xff] }
 0x10d   : > { %1601 = vmatprep.subr.mxu1 %v331_v39 }
 0x10e   : > { %1602 = vmatpush3.msra.mxu1 %v331_v39 }
 0x10f   : > { %1603 = vmatprep.subr.mxu1 %v330_v40 }
 0x110   : > { %1604 = vmatpush3.msra.mxu1 %v330_v40  ;;  %v258_v40 = vld [vmem:[%s244_s7] sm:$0xff] }
 0x111   : > { %1605 = vmatprep.subr.mxu1 %v329_v42 }
 0x112   : > { %1606 = vmatpush3.msra.mxu1 %v329_v42 }
 0x113   : > { %1607 = vmatprep.subr.mxu1 %v328_v44 }
 0x114   : > { %1608 = vmatpush3.msra.mxu1 %v328_v44 }
 0x115   : > { %1609 = vmatprep.subr.mxu1 %v327_v46 }
 0x116   : > { %1610 = vmatpush3.msra.mxu1 %v327_v46 }
 0x117   : > { %1611 = vmatprep.subr.mxu1 %v326_v48 }
 0x118   : > { %1612 = vmatpush3.msra.mxu1 %v326_v48 }
 0x1b9   : > { %v1539_v52 = vpop.f32.mrf.mxu1 }
 0x1ba   : > { %v577_v53 = vadd.f32 %v1539_v52, %v504_v51 }
 0x1bb   : > { %v571_v54 = vpop.f32.mrf.mxu1 }
 0x1bc   : > { %v572_v55 = vadd.f32 %v571_v54, %v504_v51  ;;  %v591_v57 = vmax.f32 %v577_v53, 0.0 }
 0x1be   : > { %v590_v56 = vmax.f32 %v572_v55, 0.0 }
 0x1c0   : > { %1575 = vmatprep.mubr.f32.mxu0 %v590_v56  ;;  %1613 = vmatprep.mubr.f32.mxu1 %v590_v56 }
 0x1c1   : > { %v1542_v59 = vpop.f32.mrf.mxu1  ;;  %1576 = vmatmul.mubr.f32.vlgmr.msra.gmra.mxu0 %v591_v57  ;;  %1614 = vmatmul.mubr.f32.vlgmr.msra.gmra.mxu1 %v591_v57 }
 0x1c2   : > { %1620 = vmatpush3.msra.mxu0 %v357_v49  ;;  %v587_v61 = vadd.f32 %v1542_v59, %v504_v51  ;;  %v261_v59 = vld [vmem:[%s244_s7 + $0x18] sm:$0xff] }
 0x1c3   : > { %v581_v62 = vpop.f32.mrf.mxu1  ;;  %1621 = vmatprep.subr.mxu0 %v356_v58 }
 0x1c4   : > { %v582_v63 = vadd.f32 %v581_v62, %v504_v51  ;;  %1622 = vmatpush3.msra.mxu0 %v356_v58  ;;  %v593_v1 = vmax.f32 %v587_v61, 0.0  ;;  %v260_v61 = vld [vmem:[%s244_s7 + $0x10] sm:$0xff] }
 0x1c5   : > { %1623 = vmatprep.subr.mxu0 %v355_v60 }
 0x1c6   : > { %v592_v0 = vmax.f32 %v582_v63, 0.0  ;;  %1624 = vmatpush3.msra.mxu0 %v355_v60 }
 0x1c7   : > { %1625 = vmatprep.subr.mxu0 %v354_v2 }
 0x1c8   : > { %1578 = vmatprep.mubr.f32.mxu0 %v592_v0  ;;  %1616 = vmatprep.mubr.f32.mxu1 %v592_v0 }
 0x1c9   : > { %1579 = vmatmul.mubr.f32.gmra.mxu0 %v593_v1  ;;  %1617 = vmatmul.mubr.f32.gmra.mxu1 %v593_v1 }
 0x1ca   : > { %1626 = vmatpush3.msra.mxu0 %v354_v2 }
 0x1cb   : > { %1627 = vmatprep.subr.mxu0 %v353_v3 }
 0x1cc   : > { %1628 = vmatpush3.msra.mxu0 %v353_v3 }
 0x1cd   : > { %1629 = vmatprep.subr.mxu0 %v352_v4 }
 0x1ce   : > { %1630 = vmatpush3.msra.mxu0 %v352_v4 }
 0x1cf   : > { %1631 = vmatprep.subr.mxu0 %v351_v5 }
 0x1d0   : > { %1632 = vmatpush3.msra.mxu0 %v351_v5 }
 0x1d1   : > { %1633 = vmatprep.subr.mxu0 %v350_v7 }
 0x1d2   : > { %1634 = vmatpush3.msra.mxu0 %v350_v7 }
 0x1d3   : > { %1635 = vmatprep.subr.mxu0 %v349_v9 }
 0x1d4   : > { %1636 = vmatpush3.msra.mxu0 %v349_v9 }
 0x1d5   : > { %1637 = vmatprep.subr.mxu0 %v348_v10 }
 0x1d6   : > { %1638 = vmatpush3.msra.mxu0 %v348_v10 }
 0x1d7   : > { %1639 = vmatprep.subr.mxu0 %v347_v11 }
 0x1d8   : > { %1640 = vmatpush3.msra.mxu0 %v347_v11 }
 0x1d9   : > { %1641 = vmatprep.subr.mxu0 %v346_v12 }
 0x1da   : > { %1642 = vmatpush3.msra.mxu0 %v346_v12 }
 0x1db   : > { %1643 = vmatprep.subr.mxu0 %v345_v13 }
 0x1dc   : > { %1644 = vmatpush3.msra.mxu0 %v345_v13 }
 0x1dd   : > { %1645 = vmatprep.subr.mxu0 %v344_v14 }
 0x1de   : > { %1646 = vmatpush3.msra.mxu0 %v344_v14 }
 0x1df   : > { %1647 = vmatprep.subr.mxu0 %v343_v15 }
 0x1e0   : > { %1648 = vmatpush3.msra.mxu0 %v343_v15 }
 0x1e1   : > { %1649 = vmatprep.subr.mxu0 %v342_v16 }
 0x1e2   : > { %1650 = vmatpush3.msra.mxu0 %v342_v16 }
 0x281   : > { %v1615_v19 = vpop.f32.mrf.mxu1  ;;  %v1577_v28 = vpop.f32.mrf.mxu0 }
 0x282   : > { %v759_v20 = vadd.f32 %v1615_v19, %v686_v18  ;;  %v670_v35 = vadd.f32 %v1577_v28, %v597_v30  ;;  %v373_v19 = vld [vmem:[%s2418_s3 + $0x1e8] sm:$0xff] }
 0x283   : > { %v753_v21 = vpop.f32.mrf.mxu1  ;;  %v664_v34 = vpop.f32.mrf.mxu0  ;;  %1657 = vmatprep.subr.mxu1 %v373_v19  ;;  %v364_v28 = vld [vmem:[%s2418_s3 + $0xc8] sm:$0xff] }
 0x284   : > { %v774_v22 = vmul.f32 1.442695, %v759_v20  ;;  %v754_v23 = vadd.f32 %v753_v21, %v686_v18  ;;  %v665_v36 = vadd.f32 %v664_v34, %v597_v30  ;;  %v793_v41 = vmul.f32 %v670_v35, %v670_v35  ;;  %1658 = vmatpush3.msra.mxu1 %v373_v19  ;;  %v371_v21 = vld [vmem:[%s2418_s3 + $0x1a8] sm:$0xff] }
 0x285   : > { %v805_v50 = vmul.f32 2.0, %v759_v20  ;;  %v372_v20 = vld [vmem:[%s2418_s3 + $0x1c8] sm:$0xff]  ;;  %v1762_v19 = vmov 0.0  }
 0x286   : > { %1706 = vpow2.f32 %v774_v22  ;;  %v772_v24 = vmul.f32 1.442695, %v754_v23  ;;  %v792_v45 = vmul.f32 %v665_v36, %v665_v36  ;;  %v804_v62 = vmul.f32 2.0, %v754_v23  ;;  %1659 = vmatprep.subr.mxu1 %v372_v20  ;;  %v370_v22 = vld [vmem:[%s2418_s3 + $0x188] sm:$0xff] }
 0x287   : > { %1660 = vmatpush3.msra.mxu1 %v372_v20  ;;  %v369_v23 = vld [vmem:[%s2418_s3 + $0x168] sm:$0xff]  ;;  %v919_v20 = vsub.s32 5, %v2003_v6 }
 0x288   : > { %1708 = vpow2.f32 %v772_v24  ;;  %1661 = vmatprep.subr.mxu1 %v371_v21  ;;  %v368_v24 = vld [vmem:[%s2418_s3 + $0x148] sm:$0xff] }
 0x289   : > { %v1618_v26 = vpop.f32.mrf.mxu1  ;;  %v1580_v37 = vpop.f32.mrf.mxu0  ;;  %1662 = vmatpush3.msra.mxu1 %v371_v21  ;;  %v358_v34 = vld [vmem:[%s2418_s3 + $0x8] sm:$0xff] }
 0x28a   : > { %v769_v27 = vadd.f32 %v1618_v26, %v686_v18  ;;  %v680_v51 = vadd.f32 %v1580_v37, %v597_v30  ;;  %1663 = vmatprep.subr.mxu1 %v370_v22  ;;  %v366_v26 = vld [vmem:[%s2418_s3 + $0x108] sm:$0xff]  ;;  %v403_v37 = vld [vmem:[%s2418_s3 + $0x1d8] sm:$0xff] }
 0x28b   : > { %v763_v29 = vpop.f32.mrf.mxu1  ;;  %v674_v46 = vpop.f32.mrf.mxu0  ;;  %1664 = vmatpush3.msra.mxu1 %v370_v22  ;;  %v920_v22 = vrot.slane %v2009_v8, %v919_v20 }
 0x28c   : > { %v778_v31 = vmul.f32 1.442695, %v769_v27  ;;  %v764_v32 = vadd.f32 %v763_v29, %v686_v18  ;;  %v675_v55 = vadd.f32 %v674_v46, %v597_v30  ;;  %v795_v63 = vmul.f32 %v680_v51, %v680_v51  ;;  %1665 = vmatprep.subr.mxu1 %v369_v23  ;;  %v363_v29 = vld [vmem:[%s2418_s3 + $0xa8] sm:$0xff]  ;;  %v394_v46 = vld [vmem:[%s2418_s3 + $0x150] sm:$0xff] }
 0x28d   : > { %v807_v12 = vmul.f32 2.0, %v769_v27  ;;  %1666 = vmatpush3.msra.mxu1 %v369_v23  ;;  %v365_v27 = vld [vmem:[%s2418_s3 + $0xe8] sm:$0xff] }
 0x28e   : > { %1710 = vpow2.f32 %v778_v31  ;;  %v776_v33 = vmul.f32 1.442695, %v764_v32  ;;  %v794_v2 = vmul.f32 %v675_v55, %v675_v55  ;;  %v806_v17 = vmul.f32 2.0, %v764_v32  ;;  %1667 = vmatprep.subr.mxu1 %v368_v24  ;;  %v362_v30 = vld [vmem:[%s2418_s3 + $0x88] sm:$0xff] }
 0x28f   : > { %1668 = vmatpush3.msra.mxu1 %v368_v24  ;;  %v361_v31 = vld [vmem:[%s2418_s3 + $0x68] sm:$0xff] }
 0x290   : > { %1712 = vpow2.f32 %v776_v33  ;;  %1669 = vmatprep.subr.mxu1 %v367_v25  ;;  %v360_v32 = vld [vmem:[%s2418_s3 + $0x48] sm:$0xff] }
 0x291   : > { %1670 = vmatpush3.msra.mxu1 %v367_v25  ;;  %v359_v33 = vld [vmem:[%s2418_s3 + $0x28] sm:$0xff] }
 0x292   : > { %1671 = vmatprep.subr.mxu1 %v366_v26 }
 0x293   : > { %v1707_v39 = vpop.eup %1706  ;;  %1672 = vmatpush3.msra.mxu1 %v366_v26 }
 0x294   : > { %v789_v42 = vmul.f32 %v1707_v39, %v1707_v39  ;;  %v781_v44 = vmul.f32 %v1707_v39, %v259_v38  ;;  %1673 = vmatprep.subr.mxu1 %v365_v27  ;;  %v402_v38 = vld [vmem:[%s2418_s3 + $0x1d0] sm:$0xff]  ;;  %v401_v39 = vld [vmem:[%s2418_s3 + $0x1b8] sm:$0xff] }
 0x295   : > { %v1709_v43 = vpop.eup %1708  ;;  %1674 = vmatpush3.msra.mxu1 %v365_v27 }
 0x296   : > { %v780_v47 = vmul.f32 %v1709_v43, %v258_v40  ;;  %v797_v48 = vadd.f32 %v793_v41, %v789_v42  ;;  %v788_v49 = vmul.f32 %v1709_v43, %v1709_v43  ;;  %v785_v56 = vadd.f32 %v781_v44, %v670_v35  ;;  %1675 = vmatprep.subr.mxu1 %v364_v28  ;;  %v405_v35 = vld [vmem:[%s2418_s3 + $0x1f8] sm:$0xff]  ;;  %v400_v40 = vld [vmem:[%s2418_s3 + $0x1b0] sm:$0xff] }
 0x297   : > { %1676 = vmatpush3.msra.mxu1 %v364_v28  ;;  %1018 = vmatprep.subr.mxu0 %v405_v35  ;;  %v399_v41 = vld [vmem:[%s2418_s3 + $0x198] sm:$0xff]  ;;  %v398_v42 = vld [vmem:[%s2418_s3 + $0x190] sm:$0xff]  ;;  %v407_v35 = vld [vmem:[%s2419_s4 + $0x8] sm:$0xff] }
 0x298   : > { %v784_v52 = vadd.f32 %v780_v47, %v665_v36  ;;  %v1355_v53 = vadd.f32 -1.0, %v797_v48  ;;  %v796_v54 = vadd.f32 %v792_v45, %v788_v49  ;;  %1677 = vmatprep.subr.mxu1 %v363_v29  ;;  %v404_v36 = vld [vmem:[%s2418_s3 + $0x1f0] sm:$0xff]  ;;  %v397_v43 = vld [vmem:[%s2418_s3 + $0x178] sm:$0xff] }
 0x299   : > { %1678 = vmatpush3.msra.mxu1 %v363_v29  ;;  %v396_v44 = vld [vmem:[%s2418_s3 + $0x170] sm:$0xff]  ;;  %v395_v45 = vld [vmem:[%s2418_s3 + $0x158] sm:$0xff] }
 0x29a   : > { %1651 = vmatprep.mubr.f32.mxu0 %v784_v52  ;;  %v809_v57 = vsub.f32 %v1355_v53, %v805_v50  ;;  %v1354_v58 = vadd.f32 -1.0, %v796_v54  ;;  %1679 = vmatprep.subr.mxu1 %v362_v30  ;;  %v393_v47 = vld [vmem:[%s2418_s3 + $0x138] sm:$0xff]  ;;  %v392_v48 = vld [vmem:[%s2418_s3 + $0x130] sm:$0xff] }
 0x29b   : > { %v1711_v60 = vpop.eup %1710  ;;  %1652 = vmatmul.mubr.f32.vlgmr.msra.gmra.mxu0 %v785_v56  ;;  %1680 = vmatpush3.msra.mxu1 %v362_v30  ;;  %v391_v49 = vld [vmem:[%s2418_s3 + $0x118] sm:$0xff]  ;;  %v390_v50 = vld [vmem:[%s2418_s3 + $0x110] sm:$0xff] }
 0x29c   : > { %814 = vadd.xlane.f32.xlu0 %v809_v57  ;;  %v791_v0 = vmul.f32 %v1711_v60, %v1711_v60  ;;  %v783_v3 = vmul.f32 %v1711_v60, %v261_v59  ;;  %v808_v4 = vsub.f32 %v1354_v58, %v804_v62  ;;  %1681 = vmatprep.subr.mxu1 %v361_v31  ;;  %v388_v52 = vld [vmem:[%s2418_s3 + $0xf0] sm:$0xff]  ;;  %v387_v53 = vld [vmem:[%s2418_s3 + $0xd8] sm:$0xff]  ;;  %v826_v60 = vsub.s32 4, %v2003_v6 }
 0x29d   : > { %v1713_v1 = vpop.eup %1712  ;;  %1682 = vmatpush3.msra.mxu1 %v361_v31  ;;  %1019 = vmatpush1.msra.mxu0 %v404_v36  ;;  %v386_v54 = vld [vmem:[%s2418_s3 + $0xd0] sm:$0xff]  ;;  %v383_v57 = vld [vmem:[%s2418_s3 + $0x98] sm:$0xff] }
 0x29e   : > { %v782_v5 = vmul.f32 %v1713_v1, %v260_v61  ;;  %v799_v7 = vadd.f32 %v795_v63, %v791_v0  ;;  %v790_v9 = vmul.f32 %v1713_v1, %v1713_v1  ;;  %v787_v14 = vadd.f32 %v783_v3, %v680_v51  ;;  %1683 = vmatprep.subr.mxu1 %v360_v32  ;;  %v389_v51 = vld [vmem:[%s2418_s3 + $0xf8] sm:$0xff]  ;;  %v384_v56 = vld [vmem:[%s2418_s3 + $0xb0] sm:$0xff] }
 0x29f   : > { %1684 = vmatpush3.msra.mxu1 %v360_v32  ;;  %1020 = vmatprep.subr.mxu0 %v403_v37  ;;  %v382_v58 = vld [vmem:[%s2418_s3 + $0x90] sm:$0xff]  ;;  %v381_v59 = vld [vmem:[%s2418_s3 + $0x78] sm:$0xff]  ;;  %v827_v61 = vrot.slane %v2009_v8, %v826_v60 }
 0x2a0   : > { %812 = vadd.xlane.f32.xlu0 %v808_v4  ;;  %v786_v10 = vadd.f32 %v782_v5, %v675_v55  ;;  %v1357_v11 = vadd.f32 -1.0, %v799_v7  ;;  %v798_v13 = vadd.f32 %v794_v2, %v790_v9  ;;  %1685 = vmatprep.subr.mxu1 %v359_v33  ;;  %v385_v55 = vld [vmem:[%s2418_s3 + $0xb8] sm:$0xff] }
 0x2a1   : > { %1686 = vmatpush3.msra.mxu1 %v359_v33  ;;  %1021 = vmatpush1.msra.mxu0 %v402_v38 }
 0x2a2   : > { %1654 = vmatprep.mubr.f32.mxu0 %v786_v10  ;;  %v811_v15 = vsub.f32 %v1357_v11, %v807_v12  ;;  %v1356_v16 = vadd.f32 -1.0, %v798_v13  ;;  %1687 = vmatprep.subr.mxu1 %v358_v34  ;;  %v380_v12 = vld [vmem:[%s2418_s3 + $0x70] sm:$0xff]  ;;  %v379_v13 = vld [vmem:[%s2418_s3 + $0x58] sm:$0xff] }
 0x2a3   : > { %1655 = vmatmul.mubr.f32.gmra.mxu0 %v787_v14  ;;  %1688 = vmatpush3.msra.mxu1 %v358_v34  ;;  %v378_v14 = vld [vmem:[%s2418_s3 + $0x50] sm:$0xff]  ;;  %v1012_v34 = vsub.s32 6, %v2003_v6 }
 0x2a4   : > { %818 = vadd.xlane.f32.xlu1 %v811_v15  ;;  %v810_v18 = vsub.f32 %v1356_v16, %v806_v17  ;;  %1022 = vmatprep.subr.mxu0 %v401_v39  ;;  %v377_v15 = vld [vmem:[%s2418_s3 + $0x38] sm:$0xff]  ;;  %v376_v16 = vld [vmem:[%s2418_s3 + $0x30] sm:$0xff] }
 0x2a5   : > { %1023 = vmatpush1.msra.mxu0 %v400_v40  ;;  %v375_v17 = vld [vmem:[%s2418_s3 + $0x18] sm:$0xff]  ;;  %1082 = vmatprep.mubr.f32.mxu0 %v1762_v19  ;;  %v1013_v36 = vrot.slane %v2009_v8, %v1012_v34  ;;  %v1017_v37 = vrot.slane %v407_v35, %v1012_v34 }
 0x2a6   : > { %1024 = vmatprep.subr.mxu0 %v399_v41 }
 0x2a7   : > { %1025 = vmatpush1.msra.mxu0 %v398_v42 }
 0x2a8   : > { %816 = vadd.xlane.f32.xlu1 %v810_v18  ;;  %1026 = vmatprep.subr.mxu0 %v397_v43  ;;  %v374_v18 = vld [vmem:[%s2418_s3 + $0x10] sm:$0xff] }
 0x2a9   : > { %1027 = vmatpush1.msra.mxu0 %v396_v44 }
 0x2aa   : > { %1028 = vmatprep.subr.mxu0 %v395_v45 }
 0x2ab   : > { %1029 = vmatpush1.msra.mxu0 %v394_v46 }
 0x2ac   : > { %1030 = vmatprep.subr.mxu0 %v393_v47 }
 0x2ad   : > { %1031 = vmatpush1.msra.mxu0 %v392_v48 }
 0x2ae   : > { %1032 = vmatprep.subr.mxu0 %v391_v49 }
 0x2af   : > { %1033 = vmatpush1.msra.mxu0 %v390_v50 }
 0x2b0   : > { %1034 = vmatprep.subr.mxu0 %v389_v51 }
 0x2b1   : > { %1035 = vmatpush1.msra.mxu0 %v388_v52 }
 0x2b2   : > { %1036 = vmatprep.subr.mxu0 %v387_v53 }
 0x2b3   : > { %1037 = vmatpush1.msra.mxu0 %v386_v54 }
 0x2b4   : > { %1038 = vmatprep.subr.mxu0 %v385_v55 }
 0x2b5   : > { %1039 = vmatpush1.msra.mxu0 %v384_v56 }
 0x2b6   : > { %1040 = vmatprep.subr.mxu0 %v383_v57 }
 0x2b7   : > { %1041 = vmatpush1.msra.mxu0 %v382_v58 }
 0x2b8   : > { %1042 = vmatprep.subr.mxu0 %v381_v59 }
 0x2b9   : > { %1043 = vmatpush1.msra.mxu0 %v380_v12 }
 0x2ba   : > { %1044 = vmatprep.subr.mxu0 %v379_v13 }
 0x2bb   : > { %1045 = vmatpush1.msra.mxu0 %v378_v14 }
 0x2bc   : > { %1046 = vmatprep.subr.mxu0 %v377_v15 }
 0x2bd   : > { %1047 = vmatpush1.msra.mxu0 %v376_v16 }
 0x2be   : > { %1048 = vmatprep.subr.mxu0 %v375_v17 }
 0x2bf   : > { %1049 = vmatpush1.msra.mxu0 %v374_v18 }
 0x35b   : > { %v1653_v62 = vpop.f32.mrf.mxu0 }
 0x35c   : > { %v900_v63 = vadd.f32 %v1653_v62, %v827_v61 }
 0x35d   : > { %v894_v0 = vpop.f32.mrf.mxu0 }
 0x35e   : > { %v895_v1 = vadd.f32 %v894_v0, %v827_v61  ;;  %v914_v3 = vmax.f32 %v900_v63, 0.0 }
 0x360   : > { %v913_v2 = vmax.f32 %v895_v1, 0.0 }
 0x362   : > { %1689 = vmatprep.mubr.f32.mxu1 %v913_v2 }
 0x363   : > { %v1656_v4 = vpop.f32.mrf.mxu0  ;;  %1690 = vmatmul.mubr.f32.vlgmr.msra.gmra.mxu1 %v914_v3 }
 0x364   : > { %v910_v5 = vadd.f32 %v1656_v4, %v827_v61 }
 0x365   : > { %v904_v7 = vpop.f32.mrf.mxu0 }
 0x366   : > { %v905_v9 = vadd.f32 %v904_v7, %v827_v61  ;;  %v916_v11 = vmax.f32 %v910_v5, 0.0 }
 0x368   : > { %v915_v10 = vmax.f32 %v905_v9, 0.0 }
 0x36a   : > { %1692 = vmatprep.mubr.f32.mxu1 %v915_v10 }
 0x36b   : > { %1693 = vmatmul.mubr.f32.gmra.mxu1 %v916_v11 }
 0x423   : > { %v1691_v21 = vpop.f32.mrf.mxu1 }
 0x424   : > { %v993_v25 = vadd.f32 %v1691_v21, %v920_v22 }
 0x425   : > { %v987_v23 = vpop.f32.mrf.mxu1 }
 0x426   : > { %v988_v24 = vadd.f32 %v987_v23, %v920_v22  ;;  %v1007_v28 = vmax.f32 %v993_v25, 0.0 }
 0x428   : > { %v1006_v26 = vmax.f32 %v988_v24, 0.0 }
 0x42a   : > { %1083 = vmatmul.mubr.f32.vlgmr.msra.gmra.mxu0 %v1006_v26 }
 0x42b   : > { %v1694_v27 = vpop.f32.mrf.mxu1  ;;  %1088 = vmatprep.mubr.f32.mxu0 %v1762_v19 }
 0x42c   : > { %v1003_v31 = vadd.f32 %v1694_v27, %v920_v22 }
 0x42d   : > { %v997_v29 = vpop.f32.mrf.mxu1 }
 0x42e   : > { %v998_v30 = vadd.f32 %v997_v29, %v920_v22  ;;  %1089 = vmatmul.mubr.f32.gmra.mxu0 %v1007_v28  ;;  %v1009_v33 = vmax.f32 %v1003_v31, 0.0  ;;  %v1746_v28 = vld [vmem:[%s1840_s21] sm:$0xff] }
 0x42f   : > { %1094 = vmatprep.mubr.f32.mxu0 %v1762_v19 }
 0x430   : > { %v1008_v32 = vmax.f32 %v998_v30, 0.0 }
 0x432   : > { %1095 = vmatmul.mubr.f32.gmra.mxu0 %v1008_v32  ;;  %v1747_v32 = vld [vmem:[%s1840_s21 + $0x8] sm:$0xff] }
 0x433   : > { %1100 = vmatprep.mubr.f32.mxu0 %v1762_v19 }
 0x436   : > { %1101 = vmatmul.mubr.f32.gmra.mxu0 %v1009_v33 }
 0x4ea   : > { %v1084_v38 = vpop.f32.mrf.mxu0 }
 0x4eb   : > { %v2280_v39 = vadd.f32 %v1084_v38, %v1013_v36 }
 0x4ec   : > { %v1086_v40 = vpop.f32.mrf.mxu0 }
 0x4ed   : > { %v1115_v41 = vand.u32 2147483647, %v2280_v39  ;;  %v2283_v42 = vadd.f32 %v1086_v40, %v1017_v37  ;;  %v1107_v27 = vmax.f32 %v2280_v39, 0.0  ;;  %v2318_v29 = vmul.f32 %v1746_v28, %v2280_v39  ;;  %v1749_v40 = vld [vmem:[%s1840_s21 + $0x18] sm:$0xff] }
 0x4ee   : > { %v1090_v43 = vpop.f32.mrf.mxu0 }
 0x4ef   : > { %v1123_v44 = vsub.f32 0.0, %v1115_v41  ;;  %v1116_v45 = vand.u32 2147483647, %v2283_v42  ;;  %v2286_v6 = vadd.f32 %v1090_v43, %v1013_v36  ;;  %v1108_v30 = vmax.f32 %v2283_v42, 0.0 }
 0x4f0   : > { %v1092_v46 = vpop.f32.mrf.mxu0  ;;  %v2324_v33 = vmul.f32 %v1747_v32, %v2283_v42 }
 0x4f1   : > { %v1131_v47 = vmul.f32 1.442695, %v1123_v44  ;;  %v1124_v48 = vsub.f32 0.0, %v1116_v45  ;;  %v2288_v49 = vadd.f32 %v1092_v46, %v1017_v37  ;;  %v1117_v8 = vand.u32 2147483647, %v2286_v6 }
 0x4f2   : > { %v1096_v50 = vpop.f32.mrf.mxu0  ;;  %v1109_v34 = vmax.f32 %v2286_v6, 0.0 }
 0x4f3   : > { %1714 = vpow2.f32 %v1131_v47  ;;  %v1133_v51 = vmul.f32 1.442695, %v1124_v48  ;;  %v1118_v52 = vand.u32 2147483647, %v2288_v49  ;;  %v1125_v53 = vsub.f32 0.0, %v1117_v8  ;;  %v1750_v48 = vld [vmem:[%s1840_s21 + $0x20] sm:$0xff] }
 0x4f4   : > { %v2292_v54 = vadd.f32 %v1096_v50, %v1013_v36  ;;  %v1098_v55 = vpop.f32.mrf.mxu0  ;;  %v1110_v39 = vmax.f32 %v2288_v49, 0.0  ;;  %v2336_v41 = vmul.f32 %v1749_v40, %v2288_v49 }
 0x4f5   : > { %1716 = vpow2.f32 %v1133_v51  ;;  %v1126_v56 = vsub.f32 0.0, %v1118_v52  ;;  %v2294_v57 = vadd.f32 %v1098_v55, %v1017_v37  ;;  %v1135_v58 = vmul.f32 1.442695, %v1125_v53 }
 0x4f6   : > { %v1119_v59 = vand.u32 2147483647, %v2292_v54  ;;  %v1102_v60 = vpop.f32.mrf.mxu0  ;;  %v1111_v47 = vmax.f32 %v2292_v54, 0.0  ;;  %v2345_v8 = vmul.f32 %v1750_v48, %v2292_v54 }
 0x4f7   : > { %v1137_v61 = vmul.f32 1.442695, %v1126_v56  ;;  %v1120_v62 = vand.u32 2147483647, %v2294_v57  ;;  %1718 = vpow2.f32 %v1135_v58  ;;  %v2298_v0 = vadd.f32 %v1102_v60, %v1013_v36 }
 0x4f8   : > { %v1127_v63 = vsub.f32 0.0, %v1119_v59  ;;  %v1104_v1 = vpop.f32.mrf.mxu0 }
 0x4f9   : > { %1720 = vpow2.f32 %v1137_v61  ;;  %v1128_v2 = vsub.f32 0.0, %v1120_v62  ;;  %v2300_v3 = vadd.f32 %v1104_v1, %v1017_v37  ;;  %v1121_v5 = vand.u32 2147483647, %v2298_v0  ;;  %v1748_v37 = vld [vmem:[%s1840_s21 + $0x10] sm:$0xff] }
 0x4fa   : > { %v1139_v4 = vmul.f32 1.442695, %v1127_v63  ;;  %v2331_v38 = vmul.f32 %v1748_v37, %v2286_v6  ;;  %v1112_v61 = vmax.f32 %v2294_v57, 0.0 }
 0x4fb   : > { %v1141_v7 = vmul.f32 1.442695, %v1128_v2  ;;  %v1122_v9 = vand.u32 2147483647, %v2300_v3  ;;  %v1129_v10 = vsub.f32 0.0, %v1121_v5 }
 0x4fc   : > { %1722 = vpow2.f32 %v1139_v4 }
 0x4fd   : > { %1724 = vpow2.f32 %v1141_v7  ;;  %v1130_v11 = vsub.f32 0.0, %v1122_v9  ;;  %v1143_v12 = vmul.f32 1.442695, %v1129_v10  ;;  %v1753_v9 = vld [vmem:[%s1840_s21 + $0x38] sm:$0xff] }
 0x4ff   : > { %v1145_v13 = vmul.f32 1.442695, %v1130_v11  ;;  %1726 = vpow2.f32 %v1143_v12 }
 0x500   : > { %v1715_v14 = vpop.eup %1714 }
 0x501   : > { %1728 = vpow2.f32 %v1145_v13  ;;  %v1147_v15 = vadd.f32 1.0, %v1715_v14  ;;  %v1150_v22 = vmul.f32 -0.5, %v1715_v14  ;;  %v1153_v43 = vand.u32 2147483647, %v1715_v14 }
 0x502   : > { %v1717_v16 = vpop.eup %1716 }
 0x503   : > { %1730 = vlog2.f32 %v1147_v15  ;;  %v1156_v17 = vadd.f32 1.0, %v1717_v16  ;;  %v1159_v25 = vmul.f32 -0.5, %v1717_v16  ;;  %v1151_v35 = vadd.f32 1.0, %v1150_v22 }
 0x504   : > { %v2304_v18 = vpop.eup %1718  ;;  %v1162_v53 = vand.u32 2147483647, %v1717_v16  ;;  %vm1154_vm0 = vcmp.lt.f32.partialorder %v1153_v43, 0.0004427343 }
 0x505   : > { %1732 = vlog2.f32 %v1156_v17  ;;  %v1165_v20 = vadd.f32 1.0, %v2304_v18  ;;  %v1160_v44 = vadd.f32 1.0, %v1159_v25  ;;  %v1168_v45 = vmul.f32 -0.5, %v2304_v18 }
 0x506   : > { %v2306_v19 = vpop.eup %1720  ;;  %v1152_v52 = vmul.f32 %v1715_v14, %v1151_v35  ;;  %v1171_v55 = vand.u32 2147483647, %v2304_v18  ;;  %vm1163_vm1 = vcmp.lt.f32.partialorder %v1162_v53, 0.0004427343 }
 0x507   : > { %v1174_v21 = vadd.f32 1.0, %v2306_v19  ;;  %1734 = vlog2.f32 %v1165_v20  ;;  %v1177_v50 = vmul.f32 -0.5, %v2306_v19  ;;  %v1180_v58 = vand.u32 2147483647, %v2306_v19 }
 0x508   : > { %v1161_v62 = vmul.f32 %v1717_v16, %v1160_v44  ;;  %v1169_v63 = vadd.f32 1.0, %v1168_v45  ;;  %vm2354_vm2 = vcmp.lt.f32.partialorder %v1171_v55, 0.0004427343 }
 0x509   : > { %v2310_v23 = vpop.eup %1722  ;;  %1736 = vlog2.f32 %v1174_v21  ;;  %v1178_v4 = vadd.f32 1.0, %v1177_v50  ;;  %vm2359_vm3 = vcmp.lt.f32.partialorder %v1180_v58, 0.0004427343 }
 0x50a   : > { %v2312_v24 = vpop.eup %1724  ;;  %v1183_v26 = vadd.f32 1.0, %v2310_v23  ;;  %v1186_v59 = vmul.f32 -0.5, %v2310_v23  ;;  %v1189_v10 = vand.u32 2147483647, %v2310_v23  ;;  %v1170_v21 = vmul.f32 %v2304_v18, %v1169_v63 }
 0x50b   : > { %v1192_v31 = vadd.f32 1.0, %v2312_v24  ;;  %v1195_v5 = vmul.f32 -0.5, %v2312_v24  ;;  %v1198_v15 = vand.u32 2147483647, %v2312_v24  ;;  %v1114_v63 = vmax.f32 %v2300_v3, 0.0 }
 0x50c   : > { %1738 = vlog2.f32 %v1183_v26  ;;  %v2327_v36 = vpop.eup %1726  ;;  %v1187_v14 = vadd.f32 1.0, %v1186_v59  ;;  %v1179_v26 = vmul.f32 %v2306_v19, %v1178_v4  ;;  %vm2372_vm4 = vcmp.lt.f32.partialorder %v1189_v10, 0.0004427343 }
 0x50d   : > { %1740 = vlog2.f32 %v1192_v31  ;;  %v1201_v46 = vadd.f32 1.0, %v2327_v36  ;;  %v1204_v22 = vmul.f32 -0.5, %v2327_v36  ;;  %vm2381_vm5 = vcmp.lt.f32.partialorder %v1198_v15, 0.0004427343 }
 0x50e   : > { %v2338_v42 = vpop.eup %1728  ;;  %v1188_v40 = vmul.f32 %v2310_v23, %v1187_v14  ;;  %v815_v14 = vpop.xlane.xlu0 %814 }
 0x50f   : > { %v1210_v49 = vadd.f32 1.0, %v2338_v42  ;;  %1742 = vlog2.f32 %v1201_v46  ;;  %v1213_v28 = vmul.f32 -0.5, %v2338_v42  ;;  %v1205_v46 = vadd.f32 1.0, %v1204_v22 }
 0x510   : > { %v1731_v51 = vpop.eup %1730 }
 0x511   : > { %v1149_v56 = vmul.f32 0.6931472, %v1731_v51  ;;  %1744 = vlog2.f32 %v1210_v49  ;;  %v1207_v49 = vand.u32 2147483647, %v2327_v36  ;;  %v1214_v51 = vadd.f32 1.0, %v1213_v28 }
 0x512   : > { %v1733_v60 = vpop.eup %1732  ;;  %v813_v15 = vpop.xlane.xlu0 %812 }
 0x513   : > { %v1155_v1 = vsel %vm1154_vm0, %v1152_v52, %v1149_v56  ;;  %v1158_v2 = vmul.f32 0.6931472, %v1733_v60  ;;  %v1216_v52 = vand.u32 2147483647, %v2338_v42  ;;  %v1113_v56 = vmax.f32 %v2298_v0, 0.0 }
 0x514   : > { %v1219_v7 = vadd.f32 %v1155_v1, %v1107_v27  ;;  %v1735_v11 = vpop.eup %1734  ;;  %v1196_v27 = vadd.f32 1.0, %v1195_v5  ;;  %vm1208_vm6 = vcmp.lt.f32.partialorder %v1207_v49, 0.0004427343  ;;  %v1215_v1 = vmul.f32 %v2338_v42, %v1214_v51 }
 0x515   : > { %v1164_v12 = vsel %vm1163_vm1, %v1161_v62, %v1158_v2  ;;  %v1167_v20 = vmul.f32 0.6931472, %v1735_v11  ;;  %v1206_v62 = vmul.f32 %v2327_v36, %v1205_v46  ;;  %vm1217_vm7 = vcmp.lt.f32.partialorder %v1216_v52, 0.0004427343 }
 0x516   : > { %v1737_v16 = vpop.eup %1736  ;;  %v1220_v17 = vadd.f32 %v1164_v12, %v1108_v30  ;;  %v1235_v31 = vsub.f32 %v2318_v29, %v1219_v7  ;;  %v1197_v50 = vmul.f32 %v2312_v24, %v1196_v27  ;;  %v1752_v7 = vld [vmem:[%s1840_s21 + $0x30] sm:$0xff]  ;;  %v1234_v36 = vmul.f32 %v1753_v9, %v2300_v3 }
 0x517   : > { %v1176_v25 = vmul.f32 0.6931472, %v1737_v16  ;;  %v1173_v35 = vsel %vm2354_vm2, %v1170_v21, %v1167_v20  ;;  %v820_v22 = vmul.f32 0.5, %v813_v15 }
 0x518   : > { %v1236_v32 = vsub.f32 %v2324_v33, %v1220_v17  ;;  %v1221_v19 = vadd.f32 %v1173_v35, %v1109_v34  ;;  %v821_v17 = vmul.f32 0.5, %v815_v14 }
 0x519   : > { %v1739_v18 = vpop.eup %1738  ;;  %v1182_v37 = vsel %vm2359_vm3, %v1179_v26, %v1176_v25 }
 0x51a   : > { %v1741_v33 = vpop.eup %1740  ;;  %v1243_v43 = vadd.f32 %v1236_v32, %v1235_v31  ;;  %v1222_v44 = vadd.f32 %v1182_v37, %v1110_v39  ;;  %v1185_v45 = vmul.f32 0.6931472, %v1739_v18  ;;  %v1237_v6 = vsub.f32 %v2331_v38, %v1221_v19  ;;  %v1751_v39 = vld [vmem:[%s1840_s21 + $0x28] sm:$0xff]  ;;  %s1353_s21 = sshll.u32 %s2432_s19, 3 }
 0x51b   : > { %v1194_v48 = vmul.f32 0.6931472, %v1741_v33  ;;  %v1232_v55 = vmul.f32 %v1751_v39, %v2294_v57  ;;  %s249_s22 = scalar_lea.vmem %s2420_s5, %s1353_s21 }
 0x51c   : > { %1244 = vadd.xlane.f32.xlu1 %v1243_v43  ;;  %v1238_v23 = vsub.f32 %v2336_v41, %v1222_v44  ;;  %v1191_v34 = vsel %vm2372_vm4, %v1188_v40, %v1185_v45  ;;  %v1743_v53 = vpop.eup %1742 }
 0x51d   : > { %v1200_v24 = vsel %vm2381_vm5, %v1197_v50, %v1194_v48  ;;  %v1223_v58 = vadd.f32 %v1191_v34, %v1111_v47  ;;  %v1203_v60 = vmul.f32 0.6931472, %v1743_v53 }
 0x51e   : > { %v1745_v38 = vpop.eup %1744  ;;  %v1246_v41 = vadd.f32 %v1238_v23, %v1237_v6  ;;  %v1224_v59 = vadd.f32 %v1200_v24, %v1112_v61  ;;  %v1233_v61 = vmul.f32 %v1752_v7, %v2298_v0 }
 0x51f   : > { %v1212_v57 = vmul.f32 0.6931472, %v1745_v38  ;;  %v1239_v2 = vsub.f32 %v2345_v8, %v1223_v58  ;;  %v1209_v54 = vsel %vm1208_vm6, %v1206_v62, %v1203_v60  ;;  %v819_v8 = vpop.xlane.xlu1 %818 }
 0x520   : > { %1247 = vadd.xlane.f32.xlu0 %v1246_v41  ;;  %v1240_v4 = vsub.f32 %v1232_v55, %v1224_v59  ;;  %v1225_v5 = vadd.f32 %v1209_v54, %v1113_v56  ;;  %v823_v31 = vmul.f32 0.5, %v819_v8 }
 0x521   : > { %v1218_v47 = vsel %vm1217_vm7, %v1215_v1, %v1212_v57 }
 0x522   : > { %v1249_v10 = vadd.f32 %v1240_v4, %v1239_v2  ;;  %v1226_v11 = vadd.f32 %v1218_v47, %v1114_v63  ;;  %v1241_v12 = vsub.f32 %v1233_v61, %v1225_v5 }
 0x523   : > { %v817_v16 = vpop.xlane.xlu1 %816 }
 0x524   : > { %1250 = vadd.xlane.f32.xlu0 %v1249_v10  ;;  %v1242_v13 = vsub.f32 %v1234_v36, %v1226_v11  ;;  %v822_v0 = vmul.f32 0.5, %v817_v16 }
 0x526   : > { %v1252_v42 = vadd.f32 %v1242_v13, %v1241_v12 }
 0x528   : > { %1253 = vadd.xlane.f32.xlu1 %v1252_v42 }
 0x5a5   : > { %v1245_v20 = vpop.xlane.xlu1 %1244 }
 0x5a6   : > { %v1255_v26 = vsub.f32 %v1245_v20, %v820_v22 }
 0x5a8   : > { %v1260_v32 = vsel %vm1259_vm8, %v1255_v26, 0.0 }
 0x5a9   : > { %v1248_v21 = vpop.xlane.xlu0 %1247 }
 0x5aa   : > { %v1256_v25 = vsub.f32 %v1248_v21, %v821_v17 }
 0x5ac   : > { %v1261_v27 = vsel %vm1259_vm8, %v1256_v25, 0.0 }
 0x5ad   : > { %v1251_v3 = vpop.xlane.xlu0 %1250  ;;  %v1262_v30 = vadd.f32 %v1261_v27, %v1260_v32 }
 0x5ae   : > { %v1257_v28 = vsub.f32 %v1251_v3, %v822_v0 }
 0x5b0   : > { %v1263_v35 = vsel %vm1259_vm8, %v1257_v28, 0.0 }
 0x5b1   : > { %v1254_v18 = vpop.xlane.xlu1 %1253  ;;  %v1264_v19 = vadd.f32 %v1263_v35, %v1262_v30 }
 0x5b2   : > { %v1258_v37 = vsub.f32 %v1254_v18, %v823_v31 }
 0x5b4   : > { %v1265_v40 = vsel %vm1259_vm8, %v1258_v37, 0.0 }
 0x5b5   : > { %v1266_v29 = vadd.f32 %v1265_v40, %v1264_v19 }
 0x5b7   : > { %1267 = vadd.xlane.f32.xlu0 %v1266_v29 }
 0x640   : > { %v1268_v33 = vpop.xlane.xlu0 %1267 }
 0x641   : > { %v1269_v43 = vrot.slane %v1268_v33, 4 }
 0x643   : > { %v1270_v44 = vadd.f32 %v1269_v43, %v1268_v33 }
 0x645   : > { %v1271_v45 = vrot.slane %v1270_v44, 2 }
 0x647   : > { %v1272_v46 = vadd.f32 %v1271_v45, %v1270_v44 }
 0x649   : > { %v1273_v48 = vrot.slane %v1272_v46, 1 }
 0x64b   : > { %v1274_v50 = vadd.f32 %v1273_v48, %v1272_v46 }
 0x64d   : > { %1695 = vpush %v1274_v50 }
 0x67e   : > { %s1696_s23 = spop %1695 }
 0x67f   : > { %v1276_v49 = vstv %s1696_s23 }
 0x680   : > { %1277 = vst [vmem:[%s249_s22] sm:$0xff] %v1276_v49 }
 0x681 PF: > { %s15_s18 = sadd.s32 1, %s1760_s18  }
 0x682   : > { %p12_p5 = scmp.ge.s32.totalorder %s15_s18, 4  }
 0x684   :  { %14 = sbr.rel (!%p12_p5) target bundleno = 1 (0x1), region = 73 }

</bundles_post_ra>
